<compile_context>
chip_gen: v7x
topology: tpu7x:2x2x1
jax: 0.10.0
libtpu: 0.0.40
codegen_flags: <defaults>
</compile_context>

<pallas_src>
import jax
import jax.numpy as jnp
from jax.experimental import pallas as pl
from jax.experimental.pallas import tpu as pltpu

_LANE = 128
_VPU_MAX_D = 16  # below this, skip the MXU and do broadcast FMAs on the VPU


def _critic_kernel(xT_ref, w1_ref, b1_ref, w2_ref, o_ref):
    # xT_ref: (D, TB)   w1_ref: (H, D)   b1_ref: (H, 1)   w2_ref: (H, 1)
    # o_ref : (1, TB)   (fc2 bias is added in the wrapper)
    xT = xT_ref[...]
    w1 = w1_ref[...]
    D = xT_ref.shape[0]

    if D < _VPU_MAX_D:
        # Tiny contraction depth (Pendulum: D=3): MXU fill/drain would dominate.
        # D broadcast FMAs on the VPU: h[j, :] = sum_k w1[j, k] * xT[k, :].
        h = w1[:, 0:1] * xT[0:1, :]
        for k in range(1, D):                       # short static unroll (D < 16)
            h = h + w1[:, k:k + 1] * xT[k:k + 1, :]
    else:
        # Deeper contraction: one MXU matmul, bf16 inputs / f32 accumulation
        # (MXU is natively bf16 on v5e/v6e/v7x; f32 inputs force multi-pass).
        h = jnp.dot(w1.astype(jnp.bfloat16), xT.astype(jnp.bfloat16),
                    preferred_element_type=jnp.float32)

    # bias + ReLU on the VPU (f32 elementwise; v5e VPU has no bf16).
    h = jnp.maximum(h + b1_ref[...], 0.0)           # (H, TB)

    # fc2 (out_features == 1): VPU multiply + cross-sublane reduction (XLU slot)
    # instead of an N=1 MXU matmul.  Lane-dense (1, TB) store.
    o_ref[...] = jnp.sum(h * w2_ref[...], axis=0, keepdims=True).astype(o_ref.dtype)


def _pick_batch_tile(B):
    """Pick (tb, n_tiles): lane-multiple tiles big enough to amortize per-step
    overhead; for large batches keep >= 2 tiles so the 'parallel' batch axis
    shards across both TensorCores on v7x."""
    b128 = ((B + _LANE - 1) // _LANE) * _LANE
    if b128 <= 1024:
        return b128, 1                              # single grid step
    half = ((b128 // 2 + _LANE - 1) // _LANE) * _LANE
    tb = min(4096, half)
    n_tiles = -(-b128 // tb)
    return tb, n_tiles


def critic_forward(state, w1, b1, w2, b2, *, tb=None):
    """Critic MLP forward pass.

    state: (B, input_dims) f32
    w1:    (fc1_dims, input_dims)  b1: (fc1_dims,)      [PyTorch nn.Linear layout]
    w2:    (1, fc1_dims)           b2: (1,)
    returns: (B, 1) f32 value estimates
    """
    B, D = state.shape
    H = w1.shape[0]

    if tb is None:
        tb, n_tiles = _pick_batch_tile(B)
    else:
        n_tiles = pl.cdiv(B, tb)
    B_pad = n_tiles * tb

    # Batch onto the lane dimension: a single fused transpose + cast + pad
    # (one XLA copy), no materialized zeros().at[].set() round trip.
    xT = jnp.pad(state.astype(jnp.float32).T, ((0, 0), (0, B_pad - B)))

    w1f = w1.astype(jnp.float32)                    # (H, D)
    b1c = b1.reshape(H, 1).astype(jnp.float32)      # (H, 1)
    w2c = w2.reshape(H, 1).astype(jnp.float32)      # (H, 1)

    out = pl.pallas_call(
        _critic_kernel,
        out_shape=jax.ShapeDtypeStruct((1, B_pad), jnp.float32),
        grid=(n_tiles,),
        in_specs=[
            pl.BlockSpec((D, tb), lambda i: (0, i)),   # state tiles stream
            pl.BlockSpec((H, D), lambda i: (0, 0)),    # weights stay VMEM-resident
            pl.BlockSpec((H, 1), lambda i: (0, 0)),
            pl.BlockSpec((H, 1), lambda i: (0, 0)),
        ],
        out_specs=pl.BlockSpec((1, tb), lambda i: (0, i)),  # lane-dense output
        compiler_params=pltpu.CompilerParams(
            dimension_semantics=("parallel",),   # megacore sharding on v7x; no-op on v5e/v6e
        ),
    )(xT, w1f, b1c, w2c)

    # fc2 bias added here -> no (1,1) VMEM block / DMA in the kernel.
    # Padded batch columns are garbage and sliced off.
    return (out[0, :B] + b2.astype(jnp.float32)[0]).reshape(B, 1)


def init_critic_params(key, input_dims, fc1_dims):
    """PyTorch nn.Linear default init (uniform +-1/sqrt(fan_in)), PyTorch layout."""
    k1, k2, k3, k4 = jax.random.split(key, 4)
    bound1 = 1.0 / (input_dims ** 0.5)
    bound2 = 1.0 / (fc1_dims ** 0.5)
    w1 = jax.random.uniform(k1, (fc1_dims, input_dims), jnp.float32, -bound1, bound1)
    b1 = jax.random.uniform(k2, (fc1_dims,), jnp.float32, -bound1, bound1)
    w2 = jax.random.uniform(k3, (1, fc1_dims), jnp.float32, -bound2, bound2)
    b2 = jax.random.uniform(k4, (1,), jnp.float32, -bound2, bound2)
    return w1, b1, w2, b2


if __name__ == "__main__":
    # Pendulum-v1: observation dim 3; modest hidden size; batch not a multiple
    # of 128 to exercise the padding path (single grid step: tb=256).
    batch = 200
    input_dims = 3
    fc1_dims = 32

    key = jax.random.PRNGKey(0)
    k_params, k_state = jax.random.split(key)

    w1, b1, w2, b2 = init_critic_params(k_params, input_dims, fc1_dims)
    state = jax.random.normal(k_state, (batch, input_dims), jnp.float32)

    value = jax.jit(critic_forward)(state, w1, b1, w2, b2)
    jax.block_until_ready(value)

    # Pure-JAX reference (exact PyTorch semantics: x @ W1^T + b1 -> ReLU -> @ W2^T + b2).
    ref = jnp.maximum(state @ w1.T + b1, 0.0) @ w2.T + b2

    assert value.shape == (batch, 1)
    assert jnp.allclose(value, ref, atol=1e-5, rtol=1e-5)

    print("KERNEL_OK")
</pallas_src>

<mosaic_0001>
module attributes {stable_mosaic.version = 11 : i64} {
  func.func @_critic_kernel(%arg0: i32, %arg1: memref<3x256xf32, #tpu.memory_space<vmem>>, %arg2: memref<32x3xf32, #tpu.memory_space<vmem>>, %arg3: memref<32x1xf32, #tpu.memory_space<vmem>>, %arg4: memref<32x1xf32, #tpu.memory_space<vmem>>, %arg5: memref<1x256xf32, #tpu.memory_space<vmem>>) attributes {dimension_semantics = [#tpu.dimension_semantics<parallel>], iteration_bounds = array<i64: 1>, scalar_prefetch = 0 : i64, scratch_operands = 0 : i64, tpu.core_type = #tpu.core_type<tc>, window_params = [{transform_indices = @transform_0, window_bounds = array<i64: 3, 256>}, {pipeline_mode = #tpu.pipeline_mode<synchronous>, transform_indices = @transform_1, window_bounds = array<i64: 32, 3>}, {pipeline_mode = #tpu.pipeline_mode<synchronous>, transform_indices = @transform_2, window_bounds = array<i64: 32, 1>}, {pipeline_mode = #tpu.pipeline_mode<synchronous>, transform_indices = @transform_3, window_bounds = array<i64: 32, 1>}, {transform_indices = @transform_4, window_bounds = array<i64: 1, 256>}]} {
    %c0 = arith.constant 0 : index
    %c0_0 = arith.constant 0 : index
    %0 = vector.load %arg1[%c0, %c0_0] : memref<3x256xf32, #tpu.memory_space<vmem>>, vector<3x256xf32>
    %c0_1 = arith.constant 0 : index
    %c0_2 = arith.constant 0 : index
    %1 = vector.load %arg2[%c0_1, %c0_2] : memref<32x3xf32, #tpu.memory_space<vmem>>, vector<32x3xf32>
    %2 = vector.extract_strided_slice %1 {offsets = [0, 0], sizes = [32, 1], strides = [1, 1]} : vector<32x3xf32> to vector<32x1xf32>
    %3 = vector.extract_strided_slice %0 {offsets = [0, 0], sizes = [1, 256], strides = [1, 1]} : vector<3x256xf32> to vector<1x256xf32>
    %4 = vector.broadcast %2 : vector<32x1xf32> to vector<32x256xf32>
    %5 = vector.broadcast %3 : vector<1x256xf32> to vector<32x256xf32>
    %6 = arith.mulf %4, %5 : vector<32x256xf32>
    %7 = vector.extract_strided_slice %1 {offsets = [0, 1], sizes = [32, 1], strides = [1, 1]} : vector<32x3xf32> to vector<32x1xf32>
    %8 = vector.extract_strided_slice %0 {offsets = [1, 0], sizes = [1, 256], strides = [1, 1]} : vector<3x256xf32> to vector<1x256xf32>
    %9 = vector.broadcast %7 : vector<32x1xf32> to vector<32x256xf32>
    %10 = vector.broadcast %8 : vector<1x256xf32> to vector<32x256xf32>
    %11 = arith.mulf %9, %10 : vector<32x256xf32>
    %12 = arith.addf %6, %11 : vector<32x256xf32>
    %13 = vector.extract_strided_slice %1 {offsets = [0, 2], sizes = [32, 1], strides = [1, 1]} : vector<32x3xf32> to vector<32x1xf32>
    %14 = vector.extract_strided_slice %0 {offsets = [2, 0], sizes = [1, 256], strides = [1, 1]} : vector<3x256xf32> to vector<1x256xf32>
    %15 = vector.broadcast %13 : vector<32x1xf32> to vector<32x256xf32>
    %16 = vector.broadcast %14 : vector<1x256xf32> to vector<32x256xf32>
    %17 = arith.mulf %15, %16 : vector<32x256xf32>
    %18 = arith.addf %12, %17 : vector<32x256xf32>
    %c0_3 = arith.constant 0 : index
    %c0_4 = arith.constant 0 : index
    %19 = vector.load %arg3[%c0_3, %c0_4] : memref<32x1xf32, #tpu.memory_space<vmem>>, vector<32x1xf32>
    %20 = vector.broadcast %19 : vector<32x1xf32> to vector<32x256xf32>
    %21 = arith.addf %18, %20 : vector<32x256xf32>
    %cst = arith.constant 0.000000e+00 : f32
    %22 = vector.broadcast %cst : f32 to vector<32x256xf32>
    %23 = arith.maximumf %21, %22 : vector<32x256xf32>
    %c0_5 = arith.constant 0 : index
    %c0_6 = arith.constant 0 : index
    %24 = vector.load %arg4[%c0_5, %c0_6] : memref<32x1xf32, #tpu.memory_space<vmem>>, vector<32x1xf32>
    %25 = vector.broadcast %24 : vector<32x1xf32> to vector<32x256xf32>
    %26 = arith.mulf %23, %25 : vector<32x256xf32>
    %cst_7 = arith.constant dense<0.000000e+00> : vector<256xf32>
    %27 = vector.multi_reduction <add>, %26, %cst_7 [0] : vector<32x256xf32> to vector<256xf32>
    %28 = vector.shape_cast %27 : vector<256xf32> to vector<1x256xf32>
    %c0_8 = arith.constant 0 : index
    %c0_9 = arith.constant 0 : index
    %29 = vector.load %arg5[%c0_8, %c0_9] : memref<1x256xf32, #tpu.memory_space<vmem>>, vector<1x256xf32>
    tpu.vector_store %arg5[%c0_8, %c0_9], %28 {strides = array<i32>} : memref<1x256xf32, #tpu.memory_space<vmem>>, vector<1x256xf32>,
    return
  }
  func.func @transform_0(%arg0: i32) -> (i32, i32) {
    %c0_i32 = arith.constant 0 : i32
    %c0_i32_0 = arith.constant 0 : i32
    return %c0_i32, %arg0 : i32, i32
  }
  func.func @transform_1(%arg0: i32) -> (i32, i32) {
    %c0_i32 = arith.constant 0 : i32
    %c0_i32_0 = arith.constant 0 : i32
    %c0_i32_1 = arith.constant 0 : i32
    return %c0_i32, %c0_i32_0 : i32, i32
  }
  func.func @transform_2(%arg0: i32) -> (i32, i32) {
    %c0_i32 = arith.constant 0 : i32
    %c0_i32_0 = arith.constant 0 : i32
    %c0_i32_1 = arith.constant 0 : i32
    return %c0_i32, %c0_i32_0 : i32, i32
  }
  func.func @transform_3(%arg0: i32) -> (i32, i32) {
    %c0_i32 = arith.constant 0 : i32
    %c0_i32_0 = arith.constant 0 : i32
    %c0_i32_1 = arith.constant 0 : i32
    return %c0_i32, %c0_i32_0 : i32, i32
  }
  func.func @transform_4(%arg0: i32) -> (i32, i32) {
    %c0_i32 = arith.constant 0 : i32
    %c0_i32_0 = arith.constant 0 : i32
    return %c0_i32, %arg0 : i32, i32
  }
}

</mosaic_0001>

<bundles_post_ra>
// kernel: critic_forward.1
= control target key start
LH: loop header
LB: loop body
LE: loop exit
PB: predicated region body
PF: predicated region fallthrough
CT: control target
= control target key end

     0   :  { %v298_v0 = vmov 2   ;;  %v299_v1 = vmov 1   ;;  %v300_v6 = vmov 0   ;;  %v43_v19 = vlaneseq  ;;  %s380_s1 = inlined_call_operand.vmem [shape: f32[32,3], index: 1, kind: input, shape index: {}]   ;;  %s381_s2 = inlined_call_operand.vmem [shape: f32[32,1], index: 2, kind: input, shape index: {}]   ;;  %s382_s3 = inlined_call_operand.vmem [shape: f32[32,1], index: 3, kind: input, shape index: {}]   ;;  %s383_s0 = inlined_call_operand.vmem [shape: f32[3,256], index: 0, kind: input, shape index: {}]   ;;  %s384_s4 = inlined_call_operand.vmem [shape: f32[1,256], index: 4, kind: output, shape index: {}]  }
   0x1   :  { %291 = vset.pattern.permute.xlu0 %v298_v0  ;;  %290 = vset.pattern.permute.xlu1 %v299_v1  ;;  %v18_v2 = vld [vmem:[%s380_s1] sm:$0xff]  ;;  %v19_v3 = vld [vmem:[%s380_s1 + $0x8] sm:$0xff]  ;;  %v21_v4 = vld [vmem:[%s380_s1 + $0x18] sm:$0xff] }
   0x2   :  { %120 = vperm.xlu0 %291, %v18_v2   ;;  %70 = vperm.xlu1 %290, %v18_v2   ;;  %v20_v5 = vld [vmem:[%s380_s1 + $0x10] sm:$0xff]  ;;  %v169_v7 = vld [vmem:[%s381_s2] sm:$0xff]  ;;  %v172_v8 = vld [vmem:[%s381_s2 + $0x18] sm:$0xff]  ;;  %v364_v21 = vshrl.u32 %v43_v19, 7  ;;  %vm279_vm0 = vcmp.lt.s32.totalorder %v43_v19, 256 }
   0x3   :  { %v210_v9 = vld [vmem:[%s382_s3 + $0x8] sm:$0xff]  ;;  %v212_v11 = vld [vmem:[%s382_s3 + $0x18] sm:$0xff]  ;;  %v171_v12 = vld [vmem:[%s381_s2 + $0x10] sm:$0xff] }
   0x4   :  { %v170_v10 = vld [vmem:[%s381_s2 + $0x8] sm:$0xff]  ;;  %v209_v13 = vld [vmem:[%s382_s3] sm:$0xff]  ;;  %v211_v14 = vld [vmem:[%s382_s3 + $0x10] sm:$0xff]  ;;  %v45_v23 = vsub.s32 0, %v364_v21  ;;  %v49_v24 = vsub.s32 4, %v364_v21  ;;  %v87_v26 = vsub.s32 1, %v364_v21 }
   0x5   :  { %v91_v27 = vsub.s32 5, %v364_v21  ;;  %v137_v28 = vsub.s32 2, %v364_v21  ;;  %v141_v29 = vsub.s32 6, %v364_v21  ;;  %v17_v31 = vld [vmem:[%s383_s0] sm:$0x77] }
   0x6   :  { %294 = vset.pattern.permute.xlu0 %v299_v1  ;;  %74 = vperm.xlu1 %290, %v19_v3   ;;  %v46_v32 = vrot.slane %v17_v31, %v45_v23  ;;  %v50_v33 = vrot.slane %v17_v31, %v49_v24  ;;  %v88_v34 = vrot.slane %v17_v31, %v87_v26 }
   0x7   :  { %82 = vperm.xlu0 %294, %v21_v4   ;;  %v92_v35 = vrot.slane %v17_v31, %v91_v27  ;;  %v138_v36 = vrot.slane %v17_v31, %v137_v28  ;;  %v142_v37 = vrot.slane %v17_v31, %v141_v29 }
   0x8   :  { %v56_v39 = vrot.slane %v46_v32, %v45_v23  ;;  %v60_v40 = vrot.slane %v50_v33, %v45_v23  ;;  %v98_v42 = vrot.slane %v88_v34, %v87_v26 }
   0x9   :  { %v102_v43 = vrot.slane %v92_v35, %v87_v26  ;;  %v148_v44 = vrot.slane %v138_v36, %v137_v28  ;;  %v152_v45 = vrot.slane %v142_v37, %v137_v28 }
   0xa   :  { %78 = vperm.xlu1 %290, %v20_v5  }
   0xb   :  { %295 = vset.pattern.permute.xlu0 %v300_v6 }
   0xc   :  { %24 = vperm.xlu0 %295, %v18_v2  }
   0xe   :  { %292 = vset.pattern.permute.xlu1 %v298_v0 }
   0xf   :  { %124 = vperm.xlu1 %292, %v19_v3  }
  0x10   :  { %29 = vperm.xlu0 %295, %v19_v3  }
  0x13   :  { %293 = vset.pattern.permute.xlu1 %v300_v6 }
  0x14   :  { %34 = vperm.xlu0 %295, %v20_v5   ;;  %39 = vperm.xlu1 %293, %v21_v4  }
  0x18   :  { %175 = vperm.xlu0 %295, %v169_v7   ;;  %296 = vset.pattern.permute.xlu1 %v298_v0 }
  0x19   :  { %128 = vperm.xlu1 %296, %v20_v5  }
  0x1c   :  { %190 = vperm.xlu0 %295, %v172_v8  }
  0x1d   :  { %132 = vperm.xlu1 %296, %v21_v4  }
  0x20   :  { %220 = vperm.xlu0 %295, %v210_v9  }
  0x21   :  { %297 = vset.pattern.permute.xlu1 %v300_v6 }
  0x22   :  { %180 = vperm.xlu1 %297, %v170_v10  }
  0x24   :  { %230 = vperm.xlu0 %295, %v212_v11  }
  0x26   :  { %185 = vperm.xlu1 %297, %v171_v12  }
  0x2a   :  { %215 = vperm.xlu1 %297, %v209_v13  }
  0x2e   :  { %225 = vperm.xlu1 %297, %v211_v14  }
  0x81   :  { %v71_v15 = vpop.permute.xlu1 %70  ;;  %v121_v16 = vpop.permute.xlu0 %120 }
  0x82   :  { %v103_v51 = vmul.f32 %v98_v42, %v71_v15  ;;  %v104_v52 = vmul.f32 %v102_v43, %v71_v15  ;;  %v153_v53 = vmul.f32 %v148_v44, %v121_v16  ;;  %v154_v54 = vmul.f32 %v152_v45, %v121_v16 }
  0x85   :  { %v75_v17 = vpop.permute.xlu1 %74 }
  0x86   :  { %v83_v18 = vpop.permute.xlu0 %82  ;;  %v105_v56 = vmul.f32 %v98_v42, %v75_v17  ;;  %v106_v57 = vmul.f32 %v102_v43, %v75_v17 }
  0x87   :  { %v109_v58 = vmul.f32 %v98_v42, %v83_v18  ;;  %v110_v59 = vmul.f32 %v102_v43, %v83_v18 }
  0x89   :  { %v79_v20 = vpop.permute.xlu1 %78 }
  0x8a   :  { %v107_v3 = vmul.f32 %v98_v42, %v79_v20  ;;  %v108_v4 = vmul.f32 %v102_v43, %v79_v20 }
  0x8b   :  { %v25_v22 = vpop.permute.xlu0 %24 }
  0x8c   :  { %v61_v47 = vmul.f32 %v56_v39, %v25_v22  ;;  %v62_v48 = vmul.f32 %v60_v40, %v25_v22 }
  0x8e   :  { %v125_v25 = vpop.permute.xlu1 %124  ;;  %v111_v61 = vadd.f32 %v103_v51, %v61_v47  ;;  %v112_v62 = vadd.f32 %v104_v52, %v62_v48 }
  0x8f   :  { %v30_v30 = vpop.permute.xlu0 %29  ;;  %v155_v7 = vmul.f32 %v148_v44, %v125_v25  ;;  %v156_v8 = vmul.f32 %v152_v45, %v125_v25 }
  0x90   :  { %v63_v49 = vmul.f32 %v56_v39, %v30_v30  ;;  %v64_v50 = vmul.f32 %v60_v40, %v30_v30  ;;  %v161_v13 = vadd.f32 %v153_v53, %v111_v61  ;;  %v162_v14 = vadd.f32 %v154_v54, %v112_v62 }
  0x92   :  { %v113_v1 = vadd.f32 %v105_v56, %v63_v49  ;;  %v114_v2 = vadd.f32 %v106_v57, %v64_v50 }
  0x93   :  { %v40_v38 = vpop.permute.xlu1 %39  ;;  %v35_v41 = vpop.permute.xlu0 %34 }
  0x94   :  { %v67_v63 = vmul.f32 %v56_v39, %v40_v38  ;;  %v68_v0 = vmul.f32 %v60_v40, %v40_v38  ;;  %v65_v9 = vmul.f32 %v56_v39, %v35_v41  ;;  %v66_v10 = vmul.f32 %v60_v40, %v35_v41 }
  0x95   :  { %v163_v22 = vadd.f32 %v155_v7, %v113_v1  ;;  %v164_v23 = vadd.f32 %v156_v8, %v114_v2  ;;  %v301_v2 = vmov 1966171168  }
  0x96   :  { %v117_v11 = vadd.f32 %v109_v58, %v67_v63  ;;  %v118_v12 = vadd.f32 %v110_v59, %v68_v0  ;;  %v115_v28 = vadd.f32 %v107_v3, %v65_v9  ;;  %v116_v29 = vadd.f32 %v108_v4, %v66_v10 }
  0x97   :  { %v176_v55 = vpop.permute.xlu0 %175  ;;  %v263_v3 = vunpack.c.l.s4 %v301_v2 }
  0x98   :  { %v129_v46 = vpop.permute.xlu1 %128  ;;  %v193_v24 = vadd.f32 %v176_v55, %v161_v13  ;;  %v194_v26 = vadd.f32 %v176_v55, %v162_v14 }
  0x99   :  { %v157_v17 = vmul.f32 %v148_v44, %v129_v46  ;;  %v158_v18 = vmul.f32 %v152_v45, %v129_v46  ;;  %v264_v8 = vunpack.c.0.s8 %v263_v3 }
  0x9a   :  { %v201_v34 = vmax.f32 %v193_v24, 0.0  ;;  %v202_v35 = vmax.f32 %v194_v26, 0.0 }
  0x9b   :  { %v191_v15 = vpop.permute.xlu0 %190  ;;  %v165_v32 = vadd.f32 %v157_v17, %v115_v28  ;;  %v166_v33 = vadd.f32 %v158_v18, %v116_v29  ;;  %v267_v13 = vsub.s32 %v264_v8, %v364_v21 }
  0x9c   :  { %v133_v60 = vpop.permute.xlu1 %132 }
  0x9d   :  { %v159_v5 = vmul.f32 %v148_v44, %v133_v60  ;;  %v160_v6 = vmul.f32 %v152_v45, %v133_v60 }
  0x9f   :  { %v167_v27 = vadd.f32 %v159_v5, %v117_v11  ;;  %v168_v20 = vadd.f32 %v160_v6, %v118_v12  ;;  %v221_v36 = vpop.permute.xlu0 %220 }
  0xa1   :  { %v181_v16 = vpop.permute.xlu1 %180  ;;  %v199_v37 = vadd.f32 %v191_v15, %v167_v27  ;;  %v200_v38 = vadd.f32 %v191_v15, %v168_v20 }
  0xa2   :  { %v195_v30 = vadd.f32 %v181_v16, %v163_v22  ;;  %v196_v25 = vadd.f32 %v181_v16, %v164_v23 }
  0xa3   :  { %v207_v46 = vmax.f32 %v199_v37, 0.0  ;;  %v208_v47 = vmax.f32 %v200_v38, 0.0  ;;  %v231_v52 = vpop.permute.xlu0 %230 }
  0xa4   :  { %v203_v39 = vmax.f32 %v195_v30, 0.0  ;;  %v204_v40 = vmax.f32 %v196_v25, 0.0 }
  0xa5   :  { %v186_v31 = vpop.permute.xlu1 %185  ;;  %v239_v58 = vmul.f32 %v231_v52, %v207_v46  ;;  %v240_v59 = vmul.f32 %v231_v52, %v208_v47 }
  0xa6   :  { %v197_v41 = vadd.f32 %v186_v31, %v165_v32  ;;  %v198_v42 = vadd.f32 %v186_v31, %v166_v33  ;;  %v235_v48 = vmul.f32 %v221_v36, %v203_v39  ;;  %v236_v49 = vmul.f32 %v221_v36, %v204_v40 }
  0xa8   :  { %v205_v50 = vmax.f32 %v197_v41, 0.0  ;;  %v206_v51 = vmax.f32 %v198_v42, 0.0 }
  0xa9   :  { %v216_v43 = vpop.permute.xlu1 %215 }
  0xaa   :  { %v233_v44 = vmul.f32 %v216_v43, %v201_v34  ;;  %v234_v45 = vmul.f32 %v216_v43, %v202_v35 }
  0xac   :  { %v241_v54 = vadd.f32 %v235_v48, %v233_v44  ;;  %v250_v55 = vadd.f32 %v236_v49, %v234_v45 }
  0xad   :  { %v226_v53 = vpop.permute.xlu1 %225 }
  0xae   :  { %v237_v56 = vmul.f32 %v226_v53, %v205_v50  ;;  %v238_v57 = vmul.f32 %v226_v53, %v206_v51 }
  0xb0   :  { %v242_v60 = vadd.f32 %v241_v54, %v237_v56  ;;  %v251_v61 = vadd.f32 %v250_v55, %v238_v57 }
  0xb2   :  { %v243_v62 = vadd.f32 %v242_v60, %v239_v58  ;;  %v252_v63 = vadd.f32 %v251_v61, %v240_v59 }
  0xb4   :  { %v244_v0 = vrot.slane %v243_v62, 4  ;;  %v253_v1 = vrot.slane %v252_v63, 4 }
  0xb6   :  { %v245_v4 = vadd.f32 %v244_v0, %v243_v62  ;;  %v254_v5 = vadd.f32 %v253_v1, %v252_v63 }
  0xb8   :  { %v246_v6 = vrot.slane %v245_v4, 2  ;;  %v255_v7 = vrot.slane %v254_v5, 2 }
  0xba   :  { %v247_v9 = vadd.f32 %v246_v6, %v245_v4  ;;  %v256_v10 = vadd.f32 %v255_v7, %v254_v5 }
  0xbc   :  { %v248_v11 = vrot.slane %v247_v9, 1  ;;  %v257_v12 = vrot.slane %v256_v10, 1 }
  0xbe   :  { %v249_v14 = vadd.f32 %v248_v11, %v247_v9  ;;  %v258_v15 = vadd.f32 %v257_v12, %v256_v10 }
  0xc0   :  { %v261_v16 = vcombine.low %v249_v14, %v258_v15 }
  0xc2   :  { %v268_v17 = vrot.slane %v261_v16, %v267_v13 }
  0xc4   :  { %v275_v18 = vrot.slane %v268_v17, %v267_v13 }
  0xc6   :  { %281 = vst.msk [vmem:[%s384_s4] sm:$0x3] %vm279_vm0, %v275_v18 }

</bundles_post_ra>
